<compile_context>
chip_gen: v7x
topology: tpu7x:2x2x1
jax: 0.10.0
libtpu: 0.0.40
codegen_flags: <defaults>
</compile_context>

<pallas_src>
import math
import jax
import jax.numpy as jnp
from jax.experimental import pallas as pl
from jax.experimental.pallas import tpu as pltpu


# ----------------------------------------------------------------------------- kernels
def _nerf_pe_kernel_norep(x_ref, w_ref, o_ref):
    # hidden == block (rep == 1): every output lane is unique, no replication stage.
    arg = jnp.dot(x_ref[...], w_ref[...], preferred_element_type=jnp.float32)
    o_ref[...] = jnp.sin(arg)                      # cos(t) == sin(t + pi/2), folded into arg


def _nerf_pe_kernel_rep(x_ref, w_ref, r_ref, o_ref):
    # 1) angles for the UNIQUE channels only:  arg[n, u] = scale(u)*x[n, coord(u)] + phase(u)
    arg = jnp.dot(x_ref[...], w_ref[...], preferred_element_type=jnp.float32)
    # 2) sin over the narrow unique block -> EUP work cut by rep = hidden // block.
    s = jnp.sin(arg)
    # 3) replicate to the full lane width with a 0/1 selection matmul on the idle MXU.
    o_ref[...] = jnp.dot(s, r_ref[...], preferred_element_type=jnp.float32)


# ----------------------------------------------------------------------------- layout
def _block_layout(C):
    """Per-channel (coord, is_cos, scale) for ONE unique block of the PyTorch layout."""
    if C == 2:
        n_L = 4     # block = 16
    elif C == 4:
        n_L = 8     # block = 64
    else:
        raise ValueError("wrong feat size")
    block = n_L * 2 * C
    b = jnp.arange(block)
    L = b // (2 * C)
    within = b % (2 * C)
    coord = within // 2
    is_cos = (within % 2) == 1
    scale = (2.0 ** L.astype(jnp.float32)) * math.pi
    return coord, is_cos, scale, block


def _build_weights(C, hidden_size, k):
    """Angle matrix W (k*C+1, k*block) and replication matrix R (k*block, k*hidden)."""
    coord, is_cos, scale, block = _block_layout(C)
    if hidden_size % block != 0:
        raise ValueError(f"hidden_size must be a multiple of {block} for C={C}")
    rep = hidden_size // block

    # Per-fold angle map: B[c, b] = 2^L(b) * pi if coord(b) == c else 0.
    B = (coord[None, :] == jnp.arange(C)[:, None]).astype(jnp.float32) * scale[None, :]
    phase = jnp.where(is_cos, 0.5 * math.pi, 0.0).astype(jnp.float32)      # (block,)
    Wd = jnp.kron(jnp.eye(k, dtype=jnp.float32), B)                         # (k*C, k*block)
    W = jnp.concatenate([Wd, jnp.tile(phase, k)[None, :]], axis=0)          # (k*C+1, k*block)

    # Replication: out[:, j*hidden + r*block + b] = sin_block[:, j*block + b].
    R_single = jnp.tile(jnp.eye(block, dtype=jnp.float32), (1, rep))        # (block, hidden)
    R = jnp.kron(jnp.eye(k, dtype=jnp.float32), R_single)                   # (k*block, k*hidden)
    return W, R, rep


def _fold_factor(hidden_size):
    """Minimal k such that k*hidden is a multiple of 128 lanes (unmasked stores)."""
    k = math.lcm(hidden_size, 128) // hidden_size
    return k if k <= 16 else 1   # exotic hiddens fall back to masked stores


def _round_up(a, b):
    return ((a + b - 1) // b) * b


# ----------------------------------------------------------------------------- wrapper
def nerf_pe(x, hidden_size):
    """Pallas implementation of NeRF_PE(hidden_size).forward(x)."""
    input_shape = x.shape
    C = input_shape[-1]
    k = _fold_factor(hidden_size)

    x2 = x.reshape(-1, C).astype(jnp.float32)
    N = x2.shape[0]

    # Pad rows (input side only, tiny) so the k-row lane fold is exact.  With the
    # minimal fold (k <= 8) this is rare; when it triggers, the only extra cost is
    # the pe[:N] output copy at the end.
    Np = _round_up(max(N, 1), k)
    if Np != N:
        x2 = jnp.pad(x2, ((0, Np - N), (0, 0)))
    Nk = Np // k
    KC = k * C
    KH = k * hidden_size

    W, R, rep = _build_weights(C, hidden_size, k)
    KB = W.shape[1]                                   # k * block (unique sin lanes / folded row)

    # Fold k rows into lanes and append a ones column that drives the phase row of W.
    xf = jnp.concatenate(
        [x2.reshape(Nk, KC), jnp.ones((Nk, 1), jnp.float32)], axis=1)        # (Nk, KC+1)

    # Row tile: ~4 MiB of f32 output per grid step (store-bound roofline), sublane
    # aligned, capped at 4096 rows, and additionally capped so the grid has >= 2
    # steps whenever possible (so both v7x TensorCores get work on the parallel axis).
    TB = max(8, min(4096, (4 * 1024 * 1024) // (KH * 4)))
    TB = max(8, (TB // 8) * 8)
    TB = min(TB, _round_up(-(-Nk // 2), 8), _round_up(Nk, 8))

    grid = (pl.cdiv(Nk, TB),)   # ragged last block is masked by Pallas (no output pad)

    cost = pl.CostEstimate(
        flops=int(2 * Nk * (KC + 1) * KB + (2 * Nk * KB * KH if rep > 1 else 0)),
        transcendentals=int(Nk * KB),
        bytes_accessed=int(Nk * (KC + 1) * 4 + Nk * KH * 4),
    )

    common = dict(
        out_shape=jax.ShapeDtypeStruct((Nk, KH), jnp.float32),
        grid=grid,
        out_specs=pl.BlockSpec((TB, KH), lambda i: (i, 0)),
        compiler_params=pltpu.CompilerParams(
            dimension_semantics=("parallel",),
            vmem_limit_bytes=32 * 1024 * 1024,   # safe on v5e/v6e/v7x; usage << limit
        ),
        cost_estimate=cost,
    )

    if rep > 1:
        out = pl.pallas_call(
            _nerf_pe_kernel_rep,
            in_specs=[
                pl.BlockSpec((TB, KC + 1), lambda i: (i, 0)),
                pl.BlockSpec((KC + 1, KB), lambda i: (0, 0)),
                pl.BlockSpec((KB, KH), lambda i: (0, 0)),
            ],
            **common,
        )(xf, W, R)
    else:
        out = pl.pallas_call(
            _nerf_pe_kernel_norep,
            in_specs=[
                pl.BlockSpec((TB, KC + 1), lambda i: (i, 0)),
                pl.BlockSpec((KC + 1, KB), lambda i: (0, 0)),
            ],
            **common,
        )(xf, W)

    pe = out.reshape(Np, hidden_size)                 # row-major: lane-fold undo is free
    if Np != N:
        pe = pe[:N]                                   # rare ragged case only (N % k != 0)
    return pe.reshape(tuple(input_shape[:-1]) + (hidden_size,))


# ----------------------------------------------------------------------------- reference
def nerf_pe_reference(x, hidden_size):
    """Pure-JAX reference reproducing the exact PyTorch semantics (sin/cos directly)."""
    input_shape = x.shape
    C = input_shape[-1]
    coord, is_cos, scale, block = _block_layout(C)
    rep = hidden_size // block
    x2 = x.reshape(-1, C).astype(jnp.float32)
    ang = x2[:, coord] * scale[None, :]
    blk = jnp.where(is_cos[None, :], jnp.cos(ang), jnp.sin(ang))     # (N, block)
    pe = jnp.tile(blk, (1, rep))                                     # (N, hidden)
    return pe.reshape(tuple(input_shape[:-1]) + (hidden_size,))


if __name__ == "__main__":
    key = jax.random.PRNGKey(0)
    k1, k2, k3 = jax.random.split(key, 3)

    # Case 1: last dim == 2 (positions), hidden_size = 32 -> k=4 lane fold, rep=2 path.
    x_pos = jax.random.uniform(k1, (2, 8, 2), dtype=jnp.float32)
    pe_pos = nerf_pe(x_pos, hidden_size=32)
    jax.block_until_ready(pe_pos)
    ref_pos = nerf_pe_reference(x_pos, hidden_size=32)
    assert pe_pos.shape == (2, 8, 32)
    # sin(t + pi/2) vs cos(t): mathematically exact; small f32 rounding diff allowed.
    assert jnp.allclose(pe_pos, ref_pos, atol=5e-4), "position-PE mismatch"

    # Case 2: last dim == 4 (bboxes), hidden_size = 64 -> k=2 lane fold, rep=1 path.
    x_bbox = jax.random.uniform(k2, (2, 4, 4), dtype=jnp.float32)
    pe_bbox = nerf_pe(x_bbox, hidden_size=64)
    jax.block_until_ready(pe_bbox)
    ref_bbox = nerf_pe_reference(x_bbox, hidden_size=64)
    assert pe_bbox.shape == (2, 4, 64)
    assert jnp.allclose(pe_bbox, ref_bbox, atol=5e-4), "bbox-PE mismatch"

    # Case 3: hidden_size = 128 (lane-dense, k=1), rep=8, 2 grid steps, ragged last block.
    x_pos2 = jax.random.uniform(k3, (4, 5, 2), dtype=jnp.float32)
    pe_pos2 = nerf_pe(x_pos2, hidden_size=128)
    jax.block_until_ready(pe_pos2)
    ref_pos2 = nerf_pe_reference(x_pos2, hidden_size=128)
    assert pe_pos2.shape == (4, 5, 128)
    assert jnp.allclose(pe_pos2, ref_pos2, atol=5e-4), "128-wide PE mismatch"

    print("KERNEL_OK")
</pallas_src>

<mosaic_0001>
module attributes {stable_mosaic.version = 11 : i64} {
  func.func @_nerf_pe_kernel_rep(%arg0: i32, %arg1: memref<8x9xf32, #tpu.memory_space<vmem>>, %arg2: memref<9x64xf32, #tpu.memory_space<vmem>>, %arg3: memref<64x128xf32, #tpu.memory_space<vmem>>, %arg4: memref<8x128xf32, #tpu.memory_space<vmem>>) attributes {dimension_semantics = [#tpu.dimension_semantics<parallel>], iteration_bounds = array<i64: 1>, scalar_prefetch = 0 : i64, scratch_operands = 0 : i64, tpu.core_type = #tpu.core_type<tc>, window_params = [{transform_indices = @transform_0, window_bounds = array<i64: 8, 9>}, {pipeline_mode = #tpu.pipeline_mode<synchronous>, transform_indices = @transform_1, window_bounds = array<i64: 9, 64>}, {pipeline_mode = #tpu.pipeline_mode<synchronous>, transform_indices = @transform_2, window_bounds = array<i64: 64, 128>}, {transform_indices = @transform_3, window_bounds = array<i64: 8, 128>}]} {
    %c0 = arith.constant 0 : index
    %c0_0 = arith.constant 0 : index
    %0 = vector.load %arg1[%c0, %c0_0] : memref<8x9xf32, #tpu.memory_space<vmem>>, vector<8x9xf32>
    %c0_1 = arith.constant 0 : index
    %c0_2 = arith.constant 0 : index
    %1 = vector.load %arg2[%c0_1, %c0_2] : memref<9x64xf32, #tpu.memory_space<vmem>>, vector<9x64xf32>
    %cst = arith.constant dense<0.000000e+00> : vector<8x64xf32>
    %2 = tpu.matmul %0, %1, %cst {dimension_numbers = #tpu.dot_dimension_numbers<[1], [0], [0], [1], [0, 0, 1, 1], [], []>} : vector<8x9xf32>, vector<9x64xf32>, vector<8x64xf32> -> vector<8x64xf32>
    %3 = math.sin %2 : vector<8x64xf32>
    %c0_3 = arith.constant 0 : index
    %c0_4 = arith.constant 0 : index
    %4 = vector.load %arg3[%c0_3, %c0_4] : memref<64x128xf32, #tpu.memory_space<vmem>>, vector<64x128xf32>
    %cst_5 = arith.constant dense<0.000000e+00> : vector<8x128xf32>
    %5 = tpu.matmul %3, %4, %cst_5 {dimension_numbers = #tpu.dot_dimension_numbers<[1], [0], [0], [1], [0, 0, 1, 1], [], []>} : vector<8x64xf32>, vector<64x128xf32>, vector<8x128xf32> -> vector<8x128xf32>
    %c0_6 = arith.constant 0 : index
    %c0_7 = arith.constant 0 : index
    %6 = vector.load %arg4[%c0_6, %c0_7] : memref<8x128xf32, #tpu.memory_space<vmem>>, vector<8x128xf32>
    tpu.vector_store %arg4[%c0_6, %c0_7], %5 {strides = array<i32>} : memref<8x128xf32, #tpu.memory_space<vmem>>, vector<8x128xf32>,
    return
  }
  func.func @transform_0(%arg0: i32) -> (i32, i32) {
    %c0_i32 = arith.constant 0 : i32
    %c0_i32_0 = arith.constant 0 : i32
    return %arg0, %c0_i32 : i32, i32
  }
  func.func @transform_1(%arg0: i32) -> (i32, i32) {
    %c0_i32 = arith.constant 0 : i32
    %c0_i32_0 = arith.constant 0 : i32
    %c0_i32_1 = arith.constant 0 : i32
    return %c0_i32, %c0_i32_0 : i32, i32
  }
  func.func @transform_2(%arg0: i32) -> (i32, i32) {
    %c0_i32 = arith.constant 0 : i32
    %c0_i32_0 = arith.constant 0 : i32
    %c0_i32_1 = arith.constant 0 : i32
    return %c0_i32, %c0_i32_0 : i32, i32
  }
  func.func @transform_3(%arg0: i32) -> (i32, i32) {
    %c0_i32 = arith.constant 0 : i32
    %c0_i32_0 = arith.constant 0 : i32
    return %arg0, %c0_i32 : i32, i32
  }
}

</mosaic_0001>

<bundles_post_ra>
// kernel: tpu_custom_call.1
= control target key start
LH: loop header
LB: loop body
LE: loop exit
PB: predicated region body
PF: predicated region fallthrough
CT: control target
= control target key end

     0   :  { %8 = vsyncpa [#allocation3], 0  ;;  %s642_s0 = inlined_call_operand.hbm [shape: f32[4,9], index: 0, kind: input, shape index: {}]   ;;  %s643_s1 = inlined_call_operand.hbm [shape: f32[9,64], index: 1, kind: input, shape index: {}]   ;;  %s644_s2 = inlined_call_operand.hbm [shape: f32[64,128], index: 2, kind: input, shape index: {}]   ;;  %s645_s3 = inlined_call_operand.hbm [shape: f32[4,128], index: 3, kind: output, shape index: {}]  }
   0x1   :  { %9 = vsyncpa [#allocation6], 0 }
   0x2   :  { %10 = vsyncpa [#allocation4], 0 }
   0x3   :  { %15 = vsyncadd [#allocation3], 64  ;;  %s523_s12 = smov [#allocation5]   ;;  %s429_s16 = scalar_lea.hbm %s643_s1, 256 }
   0x4   :  { %s28_s13 = sshll.u32 %s523_s12, 4  ;;  %p430_p0 = scmp.ne.s32.totalorder %s643_s1, %s429_s16  ;;  %s29_s13 = int_to_ptr.vmem [resolvable:$true] %s28_s13 }
   0x5   :  { %p433_p1 = scmp.lt.u32.totalorder %s429_s16, %s643_s1 }
   0x7   :  { %p435_p2 = pnand %p433_p1, %p430_p0 }
   0x9   :  { %438 = shalt.err (!%p435_p2)
}
   0xa   :  { %s439_s21 = scalar_lea.vmem %s29_s13, 256  ;;  %p444_p4 = scmp.lt.s32.totalorder %s29_s13, %s29_s13 }
   0xb   :  { %p440_p3 = scmp.ne.s32.totalorder %s29_s13, %s439_s21  ;;  %p445_p5 = scmp.lt.s32.totalorder %s439_s21, %s439_s21 }
   0xd   :  { %p446_p6 = por %p445_p5, %p444_p4 }
   0xf   :  { %p447_p7 = pnand %p446_p6, %p440_p3 }
  0x11   :  { %450 = shalt.err (!%p447_p7)
}
  0x12   :  { %s524_s22 = smov 128   ;;  %s525_s23 = smov 8  }
  0x13   :  { %34 = dma.hbm_to_vmem [thread:$0]  %s643_s1, 256, %s29_s13, [#allocation6], %s524_s22, %s524_s22, %s525_s23  }
  0x14   :  { %s526_s26 = smov [#allocation2]   ;;  %s451_s30 = scalar_lea.hbm %s642_s0, 64 }
  0x15   :  { %s16_s27 = sshll.u32 %s526_s26, 4  ;;  %p452_p8 = scmp.ne.s32.totalorder %s642_s0, %s451_s30  ;;  %s17_s27 = int_to_ptr.vmem [resolvable:$true] %s16_s27 }
  0x16   :  { %p455_p9 = scmp.lt.u32.totalorder %s451_s30, %s642_s0 }
  0x18   :  { %p457_p10 = pnand %p455_p9, %p452_p8 }
  0x1a   :  { %460 = shalt.err (!%p457_p10)
}
  0x1b   :  { %s461_s8 = scalar_lea.vmem %s17_s27, 64  ;;  %s465_s1 = scalar_lea.vmem %s17_s27, 128 }
  0x1c   :  { %p462_p11 = scmp.ne.s32.totalorder %s17_s27, %s461_s8  ;;  %p466_p12 = scmp.lt.s32.totalorder %s17_s27, %s17_s27 }
  0x1d   :  { %p467_p13 = scmp.lt.s32.totalorder %s465_s1, %s461_s8 }
  0x1f   :  { %p468_p0 = por %p467_p13, %p466_p12 }
  0x21   :  { %p469_p1 = pnand %p468_p0, %p462_p11 }
  0x23   :  { %472 = shalt.err (!%p469_p1)
}
  0x24   :  { %s527_s9 = smov 64   ;;  %s528_s10 = smov 4  }
  0x25   :  { %22 = dma.hbm_to_vmem [thread:$0]  %s642_s0, 64, %s17_s27, [#allocation3], %s527_s9, %s527_s9, %s528_s10  }
  0x26   :  { %s529_s13 = smov [#allocation7]   ;;  %s473_s17 = scalar_lea.hbm %s644_s2, 1024 }
  0x27   :  { %s40_s14 = sshll.u32 %s529_s13, 4  ;;  %p474_p2 = scmp.ne.s32.totalorder %s644_s2, %s473_s17  ;;  %s41_s14 = int_to_ptr.vmem [resolvable:$true] %s40_s14 }
  0x28   :  { %p477_p3 = scmp.lt.u32.totalorder %s473_s17, %s644_s2 }
  0x2a   :  { %p479_p4 = pnand %p477_p3, %p474_p2 }
  0x2c   :  { %482 = shalt.err (!%p479_p4)
}
  0x2d   :  { %s483_s24 = scalar_lea.vmem %s41_s14, 1024  ;;  %p488_p6 = scmp.lt.s32.totalorder %s41_s14, %s41_s14 }
  0x2e   :  { %p484_p5 = scmp.ne.s32.totalorder %s41_s14, %s483_s24  ;;  %p489_p7 = scmp.lt.s32.totalorder %s483_s24, %s483_s24 }
  0x30   :  { %p490_p8 = por %p489_p7, %p488_p6 }
  0x32   :  { %p491_p9 = pnand %p490_p8, %p484_p5 }
  0x34   :  { %494 = shalt.err (!%p491_p9)
}
  0x35   :  { %46 = dma.hbm_to_vmem [thread:$0]  %s644_s2, 1024, %s41_s14, [#allocation6], %s524_s22, %s524_s22, %s525_s23  }
  0x36   :  { %517 = dma.done.wait [#allocation3], 128  }
  0x37   :  { %518 = vsyncadd [#allocation3], 4294967168 }
  0x38   :  { %519 = dma.done.wait [#allocation6], 1280  }
  0x39   :  { %520 = vsyncadd [#allocation6], 4294966016  ;;  %v530_v0 = vmov 0.0|0.0   ;;  %vm531_vm0 = vmmov 0   ;;  %v532_v1 = vmov 0.0   ;;  %vm63_vm1 = vcmask 1040384  }
  0x3a   :  { %387 = vmatprep.subr.bf16.mxu0 %v530_v0  ;;  %391 = vmatprep.subr.bf16.mxu1 %v530_v0  ;;  %v57_v2 = vld [vmem:[#allocation5] sm:$0xff]  ;;  %v58_v3 = vld [vmem:[#allocation5 + $0x8] sm:$0x1]  ;;  %vm533_vm2 = vmmov 1   ;;  %v56_v5 = vld [vmem:[#allocation2] sm:$0xff]  ;;  %vm59_vm4 = vcmask 72704  }
  0x3b   :  { %365 = vmatprep.mubr.msk.f32.mxu0 %vm531_vm0, %v532_v1  ;;  %384 = vmatprep.mubr.msk.f32.mxu1 %vm531_vm0, %v532_v1  ;;  %vm389_vm3 = vmpackc.low %vm63_vm1, %vm533_vm2  ;;  %v388_v4 = vpack.c.bf16 %v58_v3, %v57_v2  ;;  %v241_v6 = vld [vmem:[#allocation7] sm:$0xff]  ;;  %v242_v7 = vld [vmem:[#allocation7 + $0x8] sm:$0xff]  ;;  %v534_v30 = vmov 683565275   ;;  %v535_v32 = vmov 2475754826  }
  0x3c   :  { %v392_v8 = vpack.c.bf16 %v242_v7, %v241_v6  ;;  %v243_v9 = vld [vmem:[#allocation7 + $0x10] sm:$0xff]  ;;  %v244_v10 = vld [vmem:[#allocation7 + $0x18] sm:$0xff]  ;;  %v245_v12 = vld [vmem:[#allocation7 + $0x20] sm:$0xff]  ;;  %v536_v35 = vmov 2131351028   ;;  %vm249_vm1 = vcmask 523264  }
  0x3d   :  { %390 = vmatpush3.bf16.msk.msra.mxu0 %vm389_vm3, %v388_v4  ;;  %v395_v11 = vpack.c.bf16 %v244_v10, %v243_v9  ;;  %v246_v13 = vld [vmem:[#allocation7 + $0x28] sm:$0xff]  ;;  %v247_v15 = vld [vmem:[#allocation7 + $0x30] sm:$0xff]  ;;  %v248_v16 = vld [vmem:[#allocation7 + $0x38] sm:$0xff]  ;;  %v537_v38 = vmov 2102212464  }
  0x3e   :  { %393 = vmatpush3.bf16.msra.mxu1 %v392_v8  ;;  %v398_v14 = vpack.c.bf16 %v246_v13, %v245_v12  ;;  %v401_v17 = vpack.c.bf16 %v248_v16, %v247_v15  ;;  %v538_v41 = vmov 920167782   ;;  %v539_v44 = vmov 1326507024  }
  0x3f   :  { %394 = vmatprep.subr.bf16.mxu1 %v530_v0 }
  0x40   :  { %366 = vmatmul.mubr.msk.f32.vlgmr.msra.gmra.mrb[0].mxu0 %vm59_vm4, %v56_v5 }
  0x42   :  { %396 = vmatpush3.bf16.msra.mxu1 %v395_v11 }
  0x43   :  { %397 = vmatprep.subr.bf16.mxu1 %v530_v0 }
  0x46   :  { %399 = vmatpush3.bf16.msra.mxu1 %v398_v14 }
  0x47   :  { %400 = vmatprep.subr.bf16.mxu1 %v530_v0 }
  0x4a   :  { %402 = vmatpush3.bf16.msra.mxu1 %v401_v17 }
 0x113   :  { %v606_v18 = vpop.f32.mrb[0].mxu0 }
 0x114   :  { %v140_v19 = vand.u32 2139095040, %v606_v18  ;;  %v367_v20 = vpop.f32.mrb[1].mxu0  ;;  %v137_v24 = vand.u32 2147483647, %v606_v18  ;;  %vm139_vm12 = vcmp.lt.s32.totalorder %v606_v18, 0  ;;  %vm229_vm2 = vweird.f32 %v606_v18 }
 0x116   :  { %v141_v21 = vshrl.u32 %v140_v19, 23  ;;  %v144_v27 = vand.u32 8388607, %v137_v24  ;;  %vm138_vm13 = vcmp.le.f32.partialorder %v137_v24, 0.7853982 }
 0x118   :  { %v344_v22 = vadd.s32 4294967169, %v141_v21  ;;  %v145_v46 = vor.u32 8388608, %v144_v27 }
 0x11a   :  { %v147_v23 = vadd.s32 1, %v344_v22  ;;  %v185_v60 = vshll.u32 %v145_v46, 8 }
 0x11c   :  { %vm148_vm5 = vcmp.gt.s32.totalorder %v147_v23, 0 }
 0x11d   :  { %v149_v25 = vsel %vm148_vm5, %v147_v23, 0 }
 0x11e   :  { %v151_v26 = vand.u32 31, %v149_v25  ;;  %v150_v29 = vshrl.u32 %v149_v25, 5 }
 0x120   :  { %v152_v28 = vsub.s32 32, %v151_v26  ;;  %v154_v31 = vshll.u32 %v534_v30, %v151_v26  ;;  %v157_v33 = vshll.u32 %v535_v32, %v151_v26  ;;  %v160_v37 = vshll.u32 %v536_v35, %v151_v26 }
 0x121   :  { %v163_v40 = vshll.u32 %v537_v38, %v151_v26  ;;  %v166_v43 = vshll.u32 %v538_v41, %v151_v26  ;;  %vm169_vm6 = vcmp.lt.s32.totalorder %v150_v29, 1  ;;  %vm172_vm7 = vcmp.lt.s32.totalorder %v150_v29, 4 }
 0x122   :  { %v155_v34 = vshrl.u32 %v535_v32, %v152_v28  ;;  %v158_v36 = vshrl.u32 %v536_v35, %v152_v28  ;;  %v161_v39 = vshrl.u32 %v537_v38, %v152_v28  ;;  %v164_v42 = vshrl.u32 %v538_v41, %v152_v28 }
 0x123   :  { %v167_v45 = vshrl.u32 %v539_v44, %v152_v28  ;;  %v153_v55 = vshrl.u32 %v534_v30, %v152_v28  ;;  %vm171_vm8 = vcmp.lt.s32.totalorder %v150_v29, 3  ;;  %vm170_vm9 = vcmp.lt.s32.totalorder %v150_v29, 2 }
 0x124   :  { %v156_v47 = vor.u32 %v155_v34, %v154_v31  ;;  %v159_v48 = vor.u32 %v158_v36, %v157_v33  ;;  %v162_v49 = vor.u32 %v161_v39, %v160_v37  ;;  %v165_v50 = vor.u32 %v164_v42, %v163_v40 }
 0x125   :  { %v168_v51 = vor.u32 %v167_v45, %v166_v43 }
 0x126   :  { %v174_v52 = vsel %vm172_vm7, %v162_v49, 2102212464  ;;  %v177_v53 = vsel %vm169_vm6, %v156_v47, %v159_v48  ;;  %v181_v54 = vsel %vm169_vm6, %v159_v48, %v162_v49  ;;  %v178_v56 = vsel %vm172_vm7, %v165_v50, 920167782 }
 0x127   :  { %v182_v57 = vsel %vm172_vm7, %v168_v51, 1326507024  ;;  %v179_v58 = vsel %vm171_vm8, %v162_v49, %v178_v56  ;;  %v173_v61 = vsel %vm169_vm6, %v153_v55, %v156_v47  ;;  %v175_v62 = vsel %vm171_vm8, %v159_v48, %v174_v52 }
 0x128   :  { %v183_v59 = vsel %vm171_vm8, %v165_v50, %v182_v57  ;;  %v180_v63 = vsel %vm170_vm9, %v177_v53, %v179_v58  ;;  %v176_v5 = vsel %vm170_vm9, %v173_v61, %v175_v62 }
 0x129   :  { %v184_v0 = vsel %vm170_vm9, %v181_v54, %v183_v59  ;;  %v615_v3 = vmul.u32.u64.low %v185_v60, %v180_v63  ;;  %v616_v4 = vmul.u32.u64.high %v185_v60, %v180_v63, %v615_v3  ;;  %v192_v7 = vmul.u32 %v185_v60, %v176_v5 }
 0x12a   :  { %v612_v1 = vmul.u32.u64.low %v185_v60, %v184_v0  ;;  %v613_v2 = vmul.u32.u64.high %v185_v60, %v184_v0, %v612_v1 }
 0x12b   :  { %v195_v6 = vadd.s32 1, %v616_v4 }
 0x12c   :  { %vm194_vm10 = vc.u32 %v613_v2, %v615_v3  ;;  %v193_v20 = vadd.s32 %v615_v3, %v613_v2 }
 0x12d   :  { %v196_v8 = vsel %vm194_vm10, %v195_v6, %v616_v4 }
 0x12e   :  { %v197_v9 = vadd.s32 %v196_v8, %v192_v7 }
 0x130   :  { %v198_v10 = vadd.s32 536870912, %v197_v9 }
 0x132   :  { %v199_v11 = vshrl.u32 %v198_v10, 30 }
 0x134   :  { %v200_v12 = vshll.u32 %v199_v11, 30  ;;  %v223_v33 = vsub.s32 4, %v199_v11 }
 0x136   :  { %v201_v13 = vsub.s32 %v197_v9, %v200_v12  ;;  %v224_v36 = vsel %vm139_vm12, %v223_v33, %v199_v11 }
 0x137   :  { %v226_v38 = vsel %vm138_vm13, 0, %v224_v36 }
 0x138   :  { %v203_v14 = vsub.s32 0, %v201_v13  ;;  %v230_v39 = vadd.s32 3, %v226_v38 }
 0x13a   :  { %v345_v15 = vmin.u32 %v203_v14, %v201_v13  ;;  %v231_v40 = vand.u32 3, %v230_v39 }
 0x13c   :  { %v205_v16 = vclz %v345_v15  ;;  %vm236_vm14 = vcmp.eq.s32.totalorder %v231_v40, 2  ;;  %vm233_vm15 = vcmp.eq.s32.totalorder %v231_v40, 0  ;;  %vm232_vm0 = vcmp.lt.s32.totalorder %v231_v40, 2 }
 0x13e   :  { %v346_v17 = vadd.s32 4294967294, %v205_v16 }
 0x140   :  { %vm347_vm11 = vcmp.lt.s32.totalorder %v346_v17, 0 }
 0x141   :  { %v208_v19 = vsel %vm347_vm11, 0, %v346_v17 }
 0x142   :  { %v209_v21 = vsub.s32 32, %v208_v19  ;;  %v213_v22 = vsub.s32 4294967266, %v208_v19  ;;  %v210_v23 = vshll.u32 %v201_v13, %v208_v19 }
 0x144   :  { %v211_v25 = vshrl.u32 %v193_v20, %v209_v21  ;;  %v214_v26 = vadd.s32 127, %v213_v22 }
 0x146   :  { %v212_v27 = vor.u32 %v211_v25, %v210_v23  ;;  %v215_v28 = vshll.u32 %v214_v26, 23 }
 0x148   :  { %v216_v29 = vor.u32 4788187, %v215_v28  ;;  %v219_v31 = vcvt.s32.f32 %v212_v27 }
 0x14a   :  { %v217_v30 = vand.u32 2147483647, %v216_v29 }
 0x14c   :  { %v220_v32 = vmul.f32 %v219_v31, %v217_v30 }
 0x14e   :  { %v221_v34 = vxor.u32 2147483648, %v220_v32 }
 0x150   :  { %v222_v35 = vsel %vm139_vm12, %v221_v34, %v220_v32 }
 0x151   :  { %v225_v37 = vsel %vm138_vm13, %v606_v18, %v222_v35 }
 0x152   :  { %425 = vcosq.f32 %v225_v37 }
 0x153   :  { %427 = vsinq.f32 %v225_v37 }
 0x15c   :  { %v426_v41 = vpop.eup %425 }
 0x15d   :  { %v428_v42 = vpop.eup %427  ;;  %v237_v43 = vxor.u32 2147483648, %v426_v41 }
 0x15e   :  { %v234_v44 = vxor.u32 2147483648, %v428_v42 }
 0x15f   :  { %v238_v45 = vsel %vm236_vm14, %v237_v43, %v428_v42 }
 0x160   :  { %v235_v46 = vsel %vm233_vm15, %v426_v41, %v234_v44 }
 0x161   :  { %v239_v24 = vsel %vm232_vm0, %v235_v46, %v238_v45 }
 0x162   :  { %v240_v47 = vsel %vm229_vm2, nan, %v239_v24 }
 0x163   :  { %385 = vmatmul.mubr.msk.f32.vlgmr.msra.gmra.mrb[0].mxu1 %vm249_vm1, %v240_v47 }
 0x236   :  { %v319_v48 = vpop.f32.mrb[0].mxu1 }
 0x237   :  { %323 = vst [vmem:[#allocation8] sm:$0xff] %v319_v48  ;;  %v386_v49 = vpop.f32.mrb[1].mxu1 }
 0x238   :  { %328 = vsyncadd [#allocation4], 64  ;;  %s540_s2 = smov [#allocation8]  }
 0x239   :  { %s329_s22 = sshll.u32 %s540_s2, 4  ;;  %s330_s22 = int_to_ptr.vmem [resolvable:$true] %s329_s22 }
 0x23a   :  { %s495_s23 = scalar_lea.vmem %s330_s22, 64  ;;  %s499_s26 = scalar_lea.vmem %s330_s22, 128 }
 0x23b   :  { %p496_p10 = scmp.ne.s32.totalorder %s330_s22, %s495_s23  ;;  %p500_p11 = scmp.lt.s32.totalorder %s330_s22, %s330_s22 }
 0x23c   :  { %p501_p12 = scmp.lt.s32.totalorder %s499_s26, %s495_s23 }
 0x23e   :  { %p502_p13 = por %p501_p12, %p500_p11 }
 0x240   :  { %p503_p0 = pnand %p502_p13, %p496_p10 }
 0x242   :  { %506 = shalt.err (!%p503_p0)
}
 0x243   :  { %s507_s29 = scalar_lea.hbm %s645_s3, 64 }
 0x244   :  { %p508_p1 = scmp.ne.s32.totalorder %s645_s3, %s507_s29  ;;  %p511_p2 = scmp.lt.u32.totalorder %s507_s29, %s645_s3 }
 0x246   :  { %p513_p3 = pnand %p511_p2, %p508_p1 }
 0x248   :  { %516 = shalt.err (!%p513_p3)
}
 0x249   :  { %335 = dma.vmem_to_hbm [thread:$0]  %s330_s22, 64, %s645_s3, [#allocation4], %s527_s9, %s527_s9, %s528_s10  }
 0x24a   :  { %521 = dma.done.wait [#allocation4], 128  }
 0x24b   :  { %522 = vsyncadd [#allocation4], 4294967168 }
 0x24c   :  { %339 = vsyncpa [#allocation3], 1 }
 0x24d   :  { %340 = vsyncpa [#allocation6], 1 }
 0x24e   :  { %341 = vsyncpa [#allocation4], 1 }

</bundles_post_ra>
